<compile_context>
chip_gen: v5e
topology: v5e:2x2
jax: 0.10.0
libtpu: 0.0.40
codegen_flags: <defaults>
</compile_context>

<pallas_src>
import functools

import jax
import jax.numpy as jnp
from jax.experimental import pallas as pl
from jax.experimental.pallas import tpu as pltpu

LANE = 128


def _round_up(n, m):
    return ((n + m - 1) // m) * m


def conv1x1_kernel(x_ref, w_ref, b_ref, o_ref):
    # x_ref: (M, Cin) bf16, w_ref: (Cin, Cout_pad) bf16,
    # b_ref: (1, Cout_pad) f32, o_ref: (M, Cout_pad) f32
    acc = jnp.dot(x_ref[...], w_ref[...], preferred_element_type=jnp.float32)
    o_ref[...] = acc + b_ref[...]


def make_conv1x1(weight, bias):
    """Build a jitted 1x1-conv apply fn with the weight preprocessed once.

    weight: (Cout, Cin, 1, 1) float32, bias: (Cout,) float32.
    Returned fn: (N, Cin, H, W) f32 -> (N, Cout, H, W) f32.
    """
    Cout, Cin = weight.shape[0], weight.shape[1]
    Cout_pad = _round_up(Cout, LANE)

    # --- one-time weight/bias prep (NOT in the per-call path) ---
    w2d = jnp.transpose(weight.reshape(Cout, Cin), (1, 0))            # (Cin, Cout)
    w_prep = jnp.zeros((Cin, Cout_pad), jnp.bfloat16)
    w_prep = w_prep.at[:, :Cout].set(w2d.astype(jnp.bfloat16))        # (Cin, Cout_pad)
    b_prep = jnp.zeros((1, Cout_pad), jnp.float32).at[:, :Cout].set(bias)

    @jax.jit
    def apply(x_nchw):
        N, cin, H, W = x_nchw.shape
        assert cin == Cin, (cin, Cin)
        M = N * H * W

        # (N, Cin, H, W) -> (M, Cin); for H=W=1 this is effectively a reshape.
        x2d = jnp.transpose(x_nchw, (0, 2, 3, 1)).reshape(M, Cin)
        x2d = x2d.astype(jnp.bfloat16)

        out_pad = pl.pallas_call(
            conv1x1_kernel,
            out_shape=jax.ShapeDtypeStruct((M, Cout_pad), jnp.float32),
            grid=(1,),
            in_specs=[
                pl.BlockSpec((M, Cin), lambda i: (0, 0)),
                pl.BlockSpec((Cin, Cout_pad), lambda i: (0, 0)),
                pl.BlockSpec((1, Cout_pad), lambda i: (0, 0)),
            ],
            out_specs=pl.BlockSpec((M, Cout_pad), lambda i: (0, 0)),
            compiler_params=pltpu.CompilerParams(
                dimension_semantics=("arbitrary",),
            ),
        )(x2d, w_prep, b_prep)

        # Drop the Cout padding, back to NCHW.
        out = out_pad[:, :Cout]
        return jnp.transpose(out.reshape(N, H, W, Cout), (0, 3, 1, 2))

    return apply


if __name__ == "__main__":
    N, Cin, H, W = 1, 76, 1, 1
    Cout = 1824

    key = jax.random.PRNGKey(0)
    kx, kw, kb = jax.random.split(key, 3)

    # Deterministic synthetic parameters (shapes from Conv2d(76, 1824, 1, 1)).
    x = jax.random.normal(kx, (N, Cin, H, W), dtype=jnp.float32)
    fan_in = Cin * 1 * 1
    bound = 1.0 / (fan_in ** 0.5)
    weight = jax.random.uniform(
        kw, (Cout, Cin, 1, 1), dtype=jnp.float32, minval=-bound, maxval=bound
    )
    bias = jax.random.uniform(
        kb, (Cout,), dtype=jnp.float32, minval=-bound, maxval=bound
    )

    conv = make_conv1x1(weight, bias)
    out = jax.block_until_ready(conv(x))
    assert out.shape == (N, Cout, H, W), out.shape

    # Exact-math reference: same bf16 operands, f32 accumulation (what the
    # kernel actually computes).
    w_bf = weight.reshape(Cout, Cin).astype(jnp.bfloat16)
    x_bf = x.reshape(N, Cin).astype(jnp.bfloat16)
    ref_bf = (
        jnp.dot(x_bf, w_bf.T, preferred_element_type=jnp.float32)
        + bias.reshape(1, Cout)
    ).reshape(N, Cout, 1, 1)
    assert jnp.allclose(out, ref_bf, atol=1e-3, rtol=1e-3), "mismatch vs bf16 reference"

    # Loose check against the full-f32 torch Conv2d semantics (bf16 rounding only).
    ref_f32 = (
        jnp.einsum("nchw,oc->nohw", x, weight.reshape(Cout, Cin))
        + bias.reshape(1, Cout, 1, 1)
    )
    assert jnp.allclose(out, ref_f32, atol=3e-2, rtol=3e-2), "mismatch vs f32 reference"

    print("KERNEL_OK")
</pallas_src>

<mosaic_0001>
module attributes {stable_mosaic.version = 11 : i64} {
  func.func @conv1x1_kernel(%arg0: i32, %arg1: memref<1x76xbf16, #tpu.memory_space<vmem>>, %arg2: memref<76x1920xbf16, #tpu.memory_space<vmem>>, %arg3: memref<1x1920xf32, #tpu.memory_space<vmem>>, %arg4: memref<1x1920xf32, #tpu.memory_space<vmem>>) attributes {dimension_semantics = [#tpu.dimension_semantics<arbitrary>], iteration_bounds = array<i64: 1>, scalar_prefetch = 0 : i64, scratch_operands = 0 : i64, tpu.core_type = #tpu.core_type<tc>, window_params = [{pipeline_mode = #tpu.pipeline_mode<synchronous>, transform_indices = @transform_0, window_bounds = array<i64: 1, 76>}, {pipeline_mode = #tpu.pipeline_mode<synchronous>, transform_indices = @transform_1, window_bounds = array<i64: 76, 1920>}, {pipeline_mode = #tpu.pipeline_mode<synchronous>, transform_indices = @transform_2, window_bounds = array<i64: 1, 1920>}, {pipeline_mode = #tpu.pipeline_mode<synchronous>, transform_indices = @transform_3, window_bounds = array<i64: 1, 1920>}]} {
    %c0 = arith.constant 0 : index
    %c0_0 = arith.constant 0 : index
    %0 = vector.load %arg1[%c0, %c0_0] : memref<1x76xbf16, #tpu.memory_space<vmem>>, vector<1x76xbf16>
    %c0_1 = arith.constant 0 : index
    %c0_2 = arith.constant 0 : index
    %1 = vector.load %arg2[%c0_1, %c0_2] : memref<76x1920xbf16, #tpu.memory_space<vmem>>, vector<76x1920xbf16>
    %cst = arith.constant dense<0.000000e+00> : vector<1x1920xf32>
    %2 = tpu.matmul %0, %1, %cst {dimension_numbers = #tpu.dot_dimension_numbers<[1], [0], [0], [1], [0, 0, 1, 1], [], []>} : vector<1x76xbf16>, vector<76x1920xbf16>, vector<1x1920xf32> -> vector<1x1920xf32>
    %c0_3 = arith.constant 0 : index
    %c0_4 = arith.constant 0 : index
    %3 = vector.load %arg3[%c0_3, %c0_4] : memref<1x1920xf32, #tpu.memory_space<vmem>>, vector<1x1920xf32>
    %4 = arith.addf %2, %3 : vector<1x1920xf32>
    %c0_5 = arith.constant 0 : index
    %c0_6 = arith.constant 0 : index
    %5 = vector.load %arg4[%c0_5, %c0_6] : memref<1x1920xf32, #tpu.memory_space<vmem>>, vector<1x1920xf32>
    tpu.vector_store %arg4[%c0_5, %c0_6], %4 {strides = array<i32>} : memref<1x1920xf32, #tpu.memory_space<vmem>>, vector<1x1920xf32>,
    return
  }
  func.func @transform_0(%arg0: i32) -> (i32, i32) {
    %c0_i32 = arith.constant 0 : i32
    %c0_i32_0 = arith.constant 0 : i32
    %c0_i32_1 = arith.constant 0 : i32
    return %c0_i32, %c0_i32_0 : i32, i32
  }
  func.func @transform_1(%arg0: i32) -> (i32, i32) {
    %c0_i32 = arith.constant 0 : i32
    %c0_i32_0 = arith.constant 0 : i32
    %c0_i32_1 = arith.constant 0 : i32
    return %c0_i32, %c0_i32_0 : i32, i32
  }
  func.func @transform_2(%arg0: i32) -> (i32, i32) {
    %c0_i32 = arith.constant 0 : i32
    %c0_i32_0 = arith.constant 0 : i32
    %c0_i32_1 = arith.constant 0 : i32
    return %c0_i32, %c0_i32_0 : i32, i32
  }
  func.func @transform_3(%arg0: i32) -> (i32, i32) {
    %c0_i32 = arith.constant 0 : i32
    %c0_i32_0 = arith.constant 0 : i32
    %c0_i32_1 = arith.constant 0 : i32
    return %c0_i32, %c0_i32_0 : i32, i32
  }
}

</mosaic_0001>

<bundles_post_ra>
// kernel: apply.1
= control target key start
LH: loop header
LB: loop body
LE: loop exit
PB: predicated region body
PF: predicated region fallthrough
CT: control target
= control target key end

     0   :  { %8 = vsyncpa [#allocation3], 0  ;;  %s1376_s0 = inlined_call_operand.vmem [shape: bf16[1,76], index: 0, kind: input, shape index: {}]   ;;  %s1377_s1 = inlined_call_operand.hbm [shape: bf16[76,1920], index: 1, kind: input, shape index: {}]   ;;  %s1378_s2 = inlined_call_operand.hbm [shape: f32[1,1920], index: 2, kind: input, shape index: {}]   ;;  %s1379_s3 = inlined_call_operand.vmem [shape: f32[1,1920], index: 3, kind: output, shape index: {}]  }
   0x1   :  { %s16_s14 = sshll.u32 %s1377_s1, 4  ;;  %s17_s14 = int_to_ptr.hbm [resolvable:$true] %s16_s14 }
   0x2   :  { %9 = vsyncpa [#allocation5], 0  ;;  %s1278_s15 = smov [#allocation2]   ;;  %s30_s19 = sshll.u32 %s1378_s2, 4  ;;  %s31_s19 = int_to_ptr.hbm [resolvable:$true] %s30_s19 }
   0x3   :  { %s18_s16 = sshll.u32 %s1278_s15, 4  ;;  %s1279_s20 = smov 960   ;;  %s19_s16 = int_to_ptr.vmem [resolvable:$true] %s18_s16 }
   0x4   :  { %s1280_s21 = smov 60   ;;  %s1281_s22 = smov [#allocation4]  }
   0x5   :  { %24 = dma.hbm_to_vmem [thread:$0]  %s17_s14, 9600, %s19_s16, [#allocation3], %s1279_s20, %s1279_s20, %s1280_s21  }
   0x6   :  { %s32_s23 = sshll.u32 %s1281_s22, 4  ;;  %s33_s23 = int_to_ptr.vmem [resolvable:$true] %s32_s23 }
   0x7   :  { %35 = dma.hbm_to_vmem [thread:$0]  %s31_s19, 240, %s33_s23, [#allocation5]  }
   0x8   :  { %1274 = dma.done.wait [#allocation3], 9600  }
   0x9   :  { %1275 = vsyncadd [#allocation3], 4294957696 }
   0xa   :  { %1276 = dma.done.wait [#allocation5], 240  }
   0xb   :  { %1277 = vsyncadd [#allocation5], 4294967056  ;;  %vm529_vm0 = vcmask 1045504   ;;  %v1074_v0 = vld [vmem:[#allocation2 + $0x1e0] sm:$0xf]  ;;  %vm525_vm1 = vcmask 621568  }
   0xc   :  { %v1214_v1 = vld [vmem:[#allocation2 + $0x218] sm:$0x30]  ;;  %v1207_v2 = vld [vmem:[#allocation2 + $0x1e4] sm:$0xf]  ;;  %v1076_v4 = vld [vmem:[#allocation2 + $0x21c] sm:$0x30] }
   0xd   :  { %v1075_v3 = vor.u32 %v1214_v1, %v1074_v0  ;;  %v1082_v5 = vld [vmem:[#allocation2 + $0x1e8] sm:$0xf]  ;;  %v1215_v6 = vld [vmem:[#allocation2 + $0x220] sm:$0x30]  ;;  %v1079_v7 = vor.u32 %v1207_v2, %v1076_v4  ;;  %v1208_v9 = vld [vmem:[#allocation2 + $0x1ec] sm:$0xf] }
   0xe   :  { %v1083_v8 = vor.u32 %v1215_v6, %v1082_v5  ;;  %v1084_v10 = vld [vmem:[#allocation2 + $0x224] sm:$0x30]  ;;  %v1199_v14 = vld [vmem:[#allocation2 + $0x1a0] sm:$0xf0]  ;;  %v1192_v15 = vld [vmem:[#allocation2 + $0x16c] sm:$0xf] }
   0xf   :  { %v1014_v11 = vld [vmem:[#allocation2 + $0x168] sm:$0xf]  ;;  %v531_v12 = vsel %vm529_vm0, %v1075_v3, 0  ;;  %v1087_v13 = vor.u32 %v1208_v9, %v1084_v10  ;;  %v534_v16 = vsel %vm529_vm0, %v1079_v7, 0  ;;  %v1022_v20 = vld [vmem:[#allocation2 + $0x170] sm:$0xf] }
  0x10   :  { %578 = vmatpush.bf16.msra.mxu0 %v531_v12  ;;  %v537_v17 = vsel %vm529_vm0, %v1083_v8, 0  ;;  %v1015_v18 = vor.u32 %v1199_v14, %v1014_v11  ;;  %v1016_v19 = vld [vmem:[#allocation2 + $0x1a4] sm:$0xf0]  ;;  %591 = vmatpush.bf16.msra.mxu1 %v534_v16  ;;  %v1200_v23 = vld [vmem:[#allocation2 + $0x1a8] sm:$0xf0]  ;;  %vm798_vm2 = vcmask 1040384  }
  0x11   :  { %604 = vmatpush.bf16.msra.mxu2 %v537_v17  ;;  %v540_v21 = vsel %vm529_vm0, %v1087_v13, 0  ;;  %v1019_v22 = vor.u32 %v1192_v15, %v1016_v19  ;;  %v1193_v24 = vld [vmem:[#allocation2 + $0x174] sm:$0xf]  ;;  %v1023_v25 = vor.u32 %v1200_v23, %v1022_v20  ;;  %v1024_v26 = vld [vmem:[#allocation2 + $0x1ac] sm:$0xf0]  ;;  %vm800_vm3 = vcmask 1042434  }
  0x12   :  { %617 = vmatpush.bf16.msra.mxu3 %v540_v21  ;;  %v954_v27 = vld [vmem:[#allocation2 + $0xf0] sm:$0xf]  ;;  %v1184_v28 = vld [vmem:[#allocation2 + $0x128] sm:$0xf0]  ;;  %v1027_v29 = vor.u32 %v1193_v24, %v1024_v26  ;;  %v1177_v30 = vld [vmem:[#allocation2 + $0xf4] sm:$0xf] }
  0x13   :  { %v956_v31 = vld [vmem:[#allocation2 + $0x12c] sm:$0xf0]  ;;  %v962_v32 = vld [vmem:[#allocation2 + $0xf8] sm:$0xf]  ;;  %v955_v33 = vor.u32 %v1184_v28, %v954_v27  ;;  %v1185_v34 = vld [vmem:[#allocation2 + $0x130] sm:$0xf0] }
  0x14   :  { %579 = vmatpush.bf16.msra.mxu0 %v1015_v18  ;;  %v1178_v35 = vld [vmem:[#allocation2 + $0xfc] sm:$0xf]  ;;  %v964_v36 = vld [vmem:[#allocation2 + $0x134] sm:$0xf0]  ;;  %592 = vmatpush.bf16.msra.mxu1 %v1019_v22  ;;  %v959_v37 = vor.u32 %v1177_v30, %v956_v31  ;;  %v963_v38 = vor.u32 %v1185_v34, %v962_v32  ;;  %v1169_v40 = vld [vmem:[#allocation2 + $0xb0] sm:$0xf0] }
  0x15   :  { %605 = vmatpush.bf16.msra.mxu2 %v1023_v25  ;;  %v894_v39 = vld [vmem:[#allocation2 + $0x78] sm:$0xf]  ;;  %v1162_v41 = vld [vmem:[#allocation2 + $0x7c] sm:$0xf]  ;;  %v967_v42 = vor.u32 %v1178_v35, %v964_v36  ;;  %v902_v44 = vld [vmem:[#allocation2 + $0x80] sm:$0xf] }
  0x16   :  { %618 = vmatpush.bf16.msra.mxu3 %v1027_v29  ;;  %v896_v43 = vld [vmem:[#allocation2 + $0xb4] sm:$0xf0]  ;;  %v1170_v45 = vld [vmem:[#allocation2 + $0xb8] sm:$0xf0]  ;;  %v1163_v46 = vld [vmem:[#allocation2 + $0x84] sm:$0xf]  ;;  %v895_v49 = vor.u32 %v1169_v40, %v894_v39 }
  0x17   :  { %v904_v47 = vld [vmem:[#allocation2 + $0xbc] sm:$0xf0]  ;;  %v1154_v50 = vld [vmem:[#allocation2 + $0x38] sm:$0xf0]  ;;  %v1147_v51 = vld [vmem:[#allocation2 + $0x4] sm:$0xf]  ;;  %v899_v53 = vor.u32 %v1162_v41, %v896_v43  ;;  %v903_v54 = vor.u32 %v1170_v45, %v902_v44 }
  0x18   :  { %v834_v48 = vld [vmem:[#allocation2] sm:$0xf]  ;;  %580 = vmatpush.bf16.msra.mxu0 %v955_v33  ;;  %593 = vmatpush.bf16.msra.mxu1 %v959_v37  ;;  %v842_v55 = vld [vmem:[#allocation2 + $0x8] sm:$0xf]  ;;  %v1155_v56 = vld [vmem:[#allocation2 + $0x40] sm:$0xf0]  ;;  %v907_v58 = vor.u32 %v1163_v46, %v904_v47 }
  0x19   :  { %v836_v52 = vld [vmem:[#allocation2 + $0x3c] sm:$0xf0]  ;;  %606 = vmatpush.bf16.msra.mxu2 %v963_v38  ;;  %v1148_v57 = vld [vmem:[#allocation2 + $0xc] sm:$0xf]  ;;  %v844_v59 = vld [vmem:[#allocation2 + $0x44] sm:$0xf0]  ;;  %v835_v2 = vor.u32 %v1154_v50, %v834_v48  ;;  %v843_v8 = vor.u32 %v1155_v56, %v842_v55 }
  0x1a   :  { %619 = vmatpush.bf16.msra.mxu3 %v967_v42  ;;  %v1090_v60 = vld [vmem:[#allocation2 + $0x1f0] sm:$0xf]  ;;  %v1216_v61 = vld [vmem:[#allocation2 + $0x228] sm:$0x30]  ;;  %v1209_v63 = vld [vmem:[#allocation2 + $0x1f4] sm:$0xf]  ;;  %v839_v3 = vor.u32 %v1147_v51, %v836_v52  ;;  %v847_v11 = vor.u32 %v1148_v57, %v844_v59 }
  0x1b   :  { %v1091_v62 = vor.u32 %v1216_v61, %v1090_v60  ;;  %v1092_v0 = vld [vmem:[#allocation2 + $0x22c] sm:$0x30]  ;;  %v1098_v1 = vld [vmem:[#allocation2 + $0x1f8] sm:$0xf]  ;;  %v1217_v5 = vld [vmem:[#allocation2 + $0x230] sm:$0x30] }
  0x1c   :  { %581 = vmatpush.bf16.msra.mxu0 %v895_v49  ;;  %v1095_v4 = vor.u32 %v1209_v63, %v1092_v0  ;;  %v1210_v6 = vld [vmem:[#allocation2 + $0x1fc] sm:$0xf]  ;;  %v1100_v7 = vld [vmem:[#allocation2 + $0x234] sm:$0x30]  ;;  %594 = vmatpush.bf16.msra.mxu1 %v899_v53  ;;  %v1099_v9 = vor.u32 %v1217_v5, %v1098_v1  ;;  %v1318_v16 = vld [vmem:[%s1376_s0] sm:$0x1] }
  0x1d   :  { %607 = vmatpush.bf16.msra.mxu2 %v903_v54  ;;  %v1103_v10 = vor.u32 %v1210_v6, %v1100_v7  ;;  %v543_v12 = vsel %vm529_vm0, %v1091_v62, 0  ;;  %v1030_v13 = vld [vmem:[#allocation2 + $0x178] sm:$0xf]  ;;  %v1201_v17 = vld [vmem:[#allocation2 + $0x1b0] sm:$0xf0]  ;;  %vm804_vm4 = vcmask 1044484  }
  0x1e   :  { %620 = vmatpush.bf16.msra.mxu3 %v907_v58  ;;  %v546_v14 = vsel %vm529_vm0, %v1095_v4, 0  ;;  %v549_v15 = vsel %vm529_vm0, %v1099_v9, 0  ;;  %v1194_v18 = vld [vmem:[#allocation2 + $0x17c] sm:$0xf]  ;;  %v1032_v19 = vld [vmem:[#allocation2 + $0x1b4] sm:$0xf0]  ;;  %v1031_v25 = vor.u32 %v1201_v17, %v1030_v13 }
  0x1f   :  { %v1038_v20 = vld [vmem:[#allocation2 + $0x180] sm:$0xf]  ;;  %v1202_v21 = vld [vmem:[#allocation2 + $0x1b8] sm:$0xf0]  ;;  %v552_v22 = vsel %vm529_vm0, %v1103_v10, 0  ;;  %v1035_v26 = vor.u32 %v1194_v18, %v1032_v19  ;;  %vm802_vm5 = vcmask 1041408  }
  0x20   :  { %582 = vmatpush.bf16.msra.mxu0 %v835_v2  ;;  %595 = vmatpush.bf16.msra.mxu1 %v839_v3  ;;  %v1195_v23 = vld [vmem:[#allocation2 + $0x184] sm:$0xf]  ;;  %v1040_v24 = vld [vmem:[#allocation2 + $0x1bc] sm:$0xf0]  ;;  %v1039_v27 = vor.u32 %v1202_v21, %v1038_v20  ;;  %v1186_v29 = vld [vmem:[#allocation2 + $0x138] sm:$0xf0] }
  0x21   :  { %608 = vmatpush.bf16.msra.mxu2 %v843_v8  ;;  %v970_v28 = vld [vmem:[#allocation2 + $0x100] sm:$0xf]  ;;  %v1179_v30 = vld [vmem:[#allocation2 + $0x104] sm:$0xf]  ;;  %v1043_v31 = vor.u32 %v1195_v23, %v1040_v24  ;;  %v978_v33 = vld [vmem:[#allocation2 + $0x108] sm:$0xf] }
  0x22   :  { %621 = vmatpush.bf16.msra.mxu3 %v847_v11  ;;  %v972_v32 = vld [vmem:[#allocation2 + $0x13c] sm:$0xf0]  ;;  %v1187_v34 = vld [vmem:[#allocation2 + $0x140] sm:$0xf0]  ;;  %v1180_v35 = vld [vmem:[#allocation2 + $0x10c] sm:$0xf]  ;;  %v971_v37 = vor.u32 %v1186_v29, %v970_v28 }
  0x23   :  { %1132 = vmatmul.msk.bf16.vlgmr.msra.gmra.mxu0 %vm525_vm1, %v1318_v16  ;;  %1133 = vmatmul.msk.bf16.vlgmr.msra.gmra.mxu1 %vm525_vm1, %v1318_v16  ;;  %v980_v36 = vld [vmem:[#allocation2 + $0x144] sm:$0xf0]  ;;  %v1171_v39 = vld [vmem:[#allocation2 + $0xc0] sm:$0xf0]  ;;  %v975_v40 = vor.u32 %v1179_v30, %v972_v32  ;;  %v979_v41 = vor.u32 %v1187_v34, %v978_v33  ;;  %v1164_v42 = vld [vmem:[#allocation2 + $0x8c] sm:$0xf] }
  0x24   :  { %630 = vmatpush.bf16.msrb.mxu0 %v543_v12  ;;  %643 = vmatpush.bf16.msrb.mxu1 %v546_v14  ;;  %v910_v38 = vld [vmem:[#allocation2 + $0x88] sm:$0xf]  ;;  %v918_v44 = vld [vmem:[#allocation2 + $0x90] sm:$0xf]  ;;  %v983_v45 = vor.u32 %v1180_v35, %v980_v36  ;;  %v1172_v46 = vld [vmem:[#allocation2 + $0xc8] sm:$0xf0] }
  0x25   :  { %656 = vmatpush.bf16.msrb.mxu2 %v549_v15  ;;  %1135 = vmatmul.msk.bf16.vlgmr.msra.gmra.mxu3 %vm525_vm1, %v1318_v16  ;;  %v912_v43 = vld [vmem:[#allocation2 + $0xc4] sm:$0xf0]  ;;  %v1165_v47 = vld [vmem:[#allocation2 + $0x94] sm:$0xf]  ;;  %v920_v48 = vld [vmem:[#allocation2 + $0xcc] sm:$0xf0]  ;;  %v911_v54 = vor.u32 %v1171_v39, %v910_v38  ;;  %v919_v59 = vor.u32 %v1172_v46, %v918_v44 }
  0x26   :  { %669 = vmatpush.bf16.msrb.mxu3 %v552_v22  ;;  %1134 = vmatmul.msk.bf16.vlgmr.msra.gmra.mxu2 %vm525_vm1, %v1318_v16  ;;  %v850_v49 = vld [vmem:[#allocation2 + $0x10] sm:$0xf]  ;;  %v1156_v50 = vld [vmem:[#allocation2 + $0x48] sm:$0xf0]  ;;  %v1106_v51 = vld [vmem:[#allocation2 + $0x200] sm:$0xf]  ;;  %v915_v58 = vor.u32 %v1164_v42, %v912_v43  ;;  %v923_v63 = vor.u32 %v1165_v47, %v920_v48 }
  0x27   :  { %v1218_v52 = vld [vmem:[#allocation2 + $0x238] sm:$0x30]  ;;  %v1211_v53 = vld [vmem:[#allocation2 + $0x204] sm:$0xf]  ;;  %v1108_v55 = vld [vmem:[#allocation2 + $0x23c] sm:$0x30]  ;;  %v851_v8 = vor.u32 %v1156_v50, %v850_v49 }
  0x28   :  { %631 = vmatpush.bf16.msrb.mxu0 %v1031_v25  ;;  %644 = vmatpush.bf16.msrb.mxu1 %v1035_v26  ;;  %v1114_v56 = vld [vmem:[#allocation2 + $0x208] sm:$0xf]  ;;  %v1219_v57 = vld [vmem:[#allocation2 + $0x240] sm:$0x30]  ;;  %v1149_v60 = vld [vmem:[#allocation2 + $0x14] sm:$0xf]  ;;  %v1107_v1 = vor.u32 %v1218_v52, %v1106_v51  ;;  %v1111_v6 = vor.u32 %v1211_v53, %v1108_v55 }
  0x29   :  { %657 = vmatpush.bf16.msrb.mxu2 %v1039_v27  ;;  %v852_v61 = vld [vmem:[#allocation2 + $0x4c] sm:$0xf0]  ;;  %v858_v62 = vld [vmem:[#allocation2 + $0x18] sm:$0xf]  ;;  %v1157_v0 = vld [vmem:[#allocation2 + $0x50] sm:$0xf0]  ;;  %v1115_v7 = vor.u32 %v1219_v57, %v1114_v56 }
  0x2a   :  { %670 = vmatpush.bf16.msrb.mxu3 %v1043_v31  ;;  %v1212_v2 = vld [vmem:[#allocation2 + $0x20c] sm:$0xf]  ;;  %v1116_v3 = vld [vmem:[#allocation2 + $0x244] sm:$0x30]  ;;  %v1150_v4 = vld [vmem:[#allocation2 + $0x1c] sm:$0xf]  ;;  %v855_v9 = vor.u32 %v1149_v60, %v852_v61  ;;  %v859_v10 = vor.u32 %v1157_v0, %v858_v62 }
  0x2b   :  { %v860_v5 = vld [vmem:[#allocation2 + $0x54] sm:$0xf0]  ;;  %v1119_v11 = vor.u32 %v1212_v2, %v1116_v3  ;;  %v555_v13 = vsel %vm529_vm0, %v1107_v1, 0  ;;  %v1046_v14 = vld [vmem:[#allocation2 + $0x188] sm:$0xf]  ;;  %v558_v15 = vsel %vm529_vm0, %v1111_v6, 0 }
  0x2c   :  { %632 = vmatpush.bf16.msrb.mxu0 %v971_v37  ;;  %645 = vmatpush.bf16.msrb.mxu1 %v975_v40  ;;  %v863_v12 = vor.u32 %v1150_v4, %v860_v5  ;;  %v561_v17 = vsel %vm529_vm0, %v1115_v7, 0  ;;  %v1203_v18 = vld [vmem:[#allocation2 + $0x1c0] sm:$0xf0]  ;;  %v1196_v19 = vld [vmem:[#allocation2 + $0x18c] sm:$0xf]  ;;  %vm806_vm6 = vcmask 1046534  }
  0x2d   :  { %658 = vmatpush.bf16.msrb.mxu2 %v979_v41  ;;  %v1048_v20 = vld [vmem:[#allocation2 + $0x1c4] sm:$0xf0]  ;;  %v1054_v21 = vld [vmem:[#allocation2 + $0x190] sm:$0xf]  ;;  %v1204_v22 = vld [vmem:[#allocation2 + $0x1c8] sm:$0xf0]  ;;  %v1047_v26 = vor.u32 %v1203_v18, %v1046_v14 }
  0x2e   :  { %671 = vmatpush.bf16.msrb.mxu3 %v983_v45  ;;  %v564_v23 = vsel %vm529_vm0, %v1119_v11, 0  ;;  %v1197_v24 = vld [vmem:[#allocation2 + $0x194] sm:$0xf]  ;;  %v1056_v25 = vld [vmem:[#allocation2 + $0x1cc] sm:$0xf0]  ;;  %v1051_v27 = vor.u32 %v1196_v19, %v1048_v20  ;;  %v1055_v28 = vor.u32 %v1204_v22, %v1054_v21  ;;  %vm808_vm7 = vcmask 1045508  }
  0x2f   :  { %v986_v29 = vld [vmem:[#allocation2 + $0x110] sm:$0xf]  ;;  %v1188_v30 = vld [vmem:[#allocation2 + $0x148] sm:$0xf0]  ;;  %v1181_v31 = vld [vmem:[#allocation2 + $0x114] sm:$0xf]  ;;  %v1059_v32 = vor.u32 %v1197_v24, %v1056_v25 }
  0x30   :  { %633 = vmatpush.bf16.msrb.mxu0 %v911_v54  ;;  %646 = vmatpush.bf16.msrb.mxu1 %v915_v58  ;;  %v988_v33 = vld [vmem:[#allocation2 + $0x14c] sm:$0xf0]  ;;  %v994_v34 = vld [vmem:[#allocation2 + $0x118] sm:$0xf]  ;;  %v1189_v35 = vld [vmem:[#allocation2 + $0x150] sm:$0xf0]  ;;  %v987_v38 = vor.u32 %v1188_v30, %v986_v29 }
  0x31   :  { %659 = vmatpush.bf16.msrb.mxu2 %v919_v59  ;;  %v1182_v36 = vld [vmem:[#allocation2 + $0x11c] sm:$0xf]  ;;  %v996_v37 = vld [vmem:[#allocation2 + $0x154] sm:$0xf0]  ;;  %v991_v40 = vor.u32 %v1181_v31, %v988_v33  ;;  %v995_v41 = vor.u32 %v1189_v35, %v994_v34  ;;  %v1173_v42 = vld [vmem:[#allocation2 + $0xd0] sm:$0xf0] }
  0x32   :  { %672 = vmatpush.bf16.msrb.mxu3 %v923_v63  ;;  %v926_v39 = vld [vmem:[#allocation2 + $0x98] sm:$0xf]  ;;  %v1166_v43 = vld [vmem:[#allocation2 + $0x9c] sm:$0xf]  ;;  %v999_v45 = vor.u32 %v1182_v36, %v996_v37  ;;  %v934_v46 = vld [vmem:[#allocation2 + $0xa0] sm:$0xf] }
  0x33   :  { %v928_v44 = vld [vmem:[#allocation2 + $0xd4] sm:$0xf0]  ;;  %v1174_v47 = vld [vmem:[#allocation2 + $0xd8] sm:$0xf0]  ;;  %v1167_v48 = vld [vmem:[#allocation2 + $0xa4] sm:$0xf]  ;;  %v927_v52 = vor.u32 %v1173_v42, %v926_v39 }
  0x34   :  { %634 = vmatpush.bf16.msrb.mxu0 %v851_v8  ;;  %647 = vmatpush.bf16.msrb.mxu1 %v855_v9  ;;  %v936_v49 = vld [vmem:[#allocation2 + $0xdc] sm:$0xf0]  ;;  %v1158_v51 = vld [vmem:[#allocation2 + $0x58] sm:$0xf0]  ;;  %v1151_v53 = vld [vmem:[#allocation2 + $0x24] sm:$0xf]  ;;  %v931_v57 = vor.u32 %v1166_v43, %v928_v44  ;;  %v935_v58 = vor.u32 %v1174_v47, %v934_v46 }
  0x35   :  { %660 = vmatpush.bf16.msrb.mxu2 %v859_v10  ;;  %v866_v50 = vld [vmem:[#allocation2 + $0x20] sm:$0xf]  ;;  %v1122_v54 = vld [vmem:[#allocation2 + $0x210] sm:$0xf]  ;;  %v1220_v55 = vld [vmem:[#allocation2 + $0x248] sm:$0x30]  ;;  %v939_v62 = vor.u32 %v1167_v48, %v936_v49 }
  0x36   :  { %673 = vmatpush.bf16.msrb.mxu3 %v863_v12  ;;  %v1213_v56 = vld [vmem:[#allocation2 + $0x214] sm:$0xf]  ;;  %v1124_v59 = vld [vmem:[#allocation2 + $0x24c] sm:$0x30]  ;;  %v1130_v60 = vld [vmem:[#allocation2 + $0x218] sm:$0xf]  ;;  %v1123_v4 = vor.u32 %v1220_v55, %v1122_v54  ;;  %v867_v5 = vor.u32 %v1158_v51, %v866_v50 }
  0x37   :  { %1136 = vmatmul.msk.bf16.vlgmr.msrb.gmra.mxu0 %vm525_vm1, %v1318_v16  ;;  %1137 = vmatmul.msk.bf16.vlgmr.msrb.gmra.mxu1 %vm525_vm1, %v1318_v16  ;;  %v1221_v61 = vld [vmem:[#allocation2 + $0x250] sm:$0x30]  ;;  %v868_v63 = vld [vmem:[#allocation2 + $0x5c] sm:$0xf0]  ;;  %v874_v0 = vld [vmem:[#allocation2 + $0x28] sm:$0xf]  ;;  %v1127_v6 = vor.u32 %v1213_v56, %v1124_v59 }
  0x38   :  { %682 = vmatpush.bf16.msra.mxu0 %v555_v13  ;;  %695 = vmatpush.bf16.msra.mxu1 %v558_v15  ;;  %v1159_v1 = vld [vmem:[#allocation2 + $0x60] sm:$0xf0]  ;;  %v1152_v2 = vld [vmem:[#allocation2 + $0x2c] sm:$0xf]  ;;  %v876_v3 = vld [vmem:[#allocation2 + $0x64] sm:$0xf0]  ;;  %v1131_v7 = vor.u32 %v1221_v61, %v1130_v60  ;;  %v871_v8 = vor.u32 %v1151_v53, %v868_v63 }
  0x39   :  { %708 = vmatpush.bf16.msra.mxu2 %v561_v17  ;;  %1139 = vmatmul.msk.bf16.vlgmr.msrb.gmra.mxu3 %vm525_vm1, %v1318_v16  ;;  %v875_v9 = vor.u32 %v1159_v1, %v874_v0  ;;  %v879_v10 = vor.u32 %v1152_v2, %v876_v3  ;;  %v1062_v11 = vld [vmem:[#allocation2 + $0x198] sm:$0xf]  ;;  %v1205_v12 = vld [vmem:[#allocation2 + $0x1d0] sm:$0xf0]  ;;  %v567_v13 = vsel %vm529_vm0, %v1123_v4, 0  ;;  %v570_v17 = vsel %vm529_vm0, %v1127_v6, 0 }
  0x3a   :  { %721 = vmatpush.bf16.msra.mxu3 %v564_v23  ;;  %1138 = vmatmul.msk.bf16.vlgmr.msrb.gmra.mxu2 %vm525_vm1, %v1318_v16  ;;  %v1198_v14 = vld [vmem:[#allocation2 + $0x19c] sm:$0xf]  ;;  %v1064_v15 = vld [vmem:[#allocation2 + $0x1d4] sm:$0xf0]  ;;  %v573_v18 = vsel %vm529_vm0, %v1131_v7, 0  ;;  %v1063_v21 = vor.u32 %v1205_v12, %v1062_v11  ;;  %vm810_vm8 = vcmask 1043456  }
  0x3b   :  { %v1070_v19 = vld [vmem:[#allocation2 + $0x1a0] sm:$0xf]  ;;  %v1206_v20 = vld [vmem:[#allocation2 + $0x1d8] sm:$0xf0]  ;;  %v1067_v22 = vor.u32 %v1198_v14, %v1064_v15  ;;  %v1191_v29 = vld [vmem:[#allocation2 + $0x160] sm:$0xf0] }
  0x3c   :  { %683 = vmatpush.bf16.msra.mxu0 %v1047_v26  ;;  %696 = vmatpush.bf16.msra.mxu1 %v1051_v27  ;;  %v1071_v23 = vor.u32 %v1206_v20, %v1070_v19  ;;  %v1002_v24 = vld [vmem:[#allocation2 + $0x120] sm:$0xf]  ;;  %v1190_v25 = vld [vmem:[#allocation2 + $0x158] sm:$0xf0]  ;;  %v1183_v26 = vld [vmem:[#allocation2 + $0x124] sm:$0xf] }
  0x3d   :  { %709 = vmatpush.bf16.msra.mxu2 %v1055_v28  ;;  %v1004_v27 = vld [vmem:[#allocation2 + $0x15c] sm:$0xf0]  ;;  %v1010_v28 = vld [vmem:[#allocation2 + $0x128] sm:$0xf]  ;;  %v1003_v30 = vor.u32 %v1190_v25, %v1002_v24  ;;  %v1175_v34 = vld [vmem:[#allocation2 + $0xe0] sm:$0xf0] }
  0x3e   :  { %722 = vmatpush.bf16.msra.mxu3 %v1059_v32  ;;  %v1007_v31 = vor.u32 %v1183_v26, %v1004_v27  ;;  %v1011_v32 = vor.u32 %v1191_v29, %v1010_v28  ;;  %v942_v33 = vld [vmem:[#allocation2 + $0xa8] sm:$0xf]  ;;  %v1168_v35 = vld [vmem:[#allocation2 + $0xac] sm:$0xf]  ;;  %v950_v37 = vld [vmem:[#allocation2 + $0xb0] sm:$0xf] }
  0x3f   :  { %v944_v36 = vld [vmem:[#allocation2 + $0xe4] sm:$0xf0]  ;;  %v943_v39 = vor.u32 %v1175_v34, %v942_v33  ;;  %v882_v42 = vld [vmem:[#allocation2 + $0x30] sm:$0xf]  ;;  %v1160_v43 = vld [vmem:[#allocation2 + $0x68] sm:$0xf0] }
  0x40   :  { %684 = vmatpush.bf16.msra.mxu0 %v987_v38  ;;  %697 = vmatpush.bf16.msra.mxu1 %v991_v40  ;;  %v1176_v38 = vld [vmem:[#allocation2 + $0xe8] sm:$0xf0]  ;;  %v947_v40 = vor.u32 %v1168_v35, %v944_v36  ;;  %v1153_v44 = vld [vmem:[#allocation2 + $0x34] sm:$0xf]  ;;  %v890_v46 = vld [vmem:[#allocation2 + $0x38] sm:$0xf]  ;;  %v883_v48 = vor.u32 %v1160_v43, %v882_v42 }
  0x41   :  { %710 = vmatpush.bf16.msra.mxu2 %v995_v41  ;;  %v951_v41 = vor.u32 %v1176_v38, %v950_v37  ;;  %v1161_v47 = vld [vmem:[#allocation2 + $0x70] sm:$0xf0] }
  0x42   :  { %723 = vmatpush.bf16.msra.mxu3 %v999_v45  ;;  %v884_v45 = vld [vmem:[#allocation2 + $0x6c] sm:$0xf0]  ;;  %v891_v50 = vor.u32 %v1161_v47, %v890_v46 }
  0x43   :  { %v887_v49 = vor.u32 %v1153_v44, %v884_v45 }
  0x44   :  { %685 = vmatpush.bf16.msra.mxu0 %v927_v52  ;;  %698 = vmatpush.bf16.msra.mxu1 %v931_v57  ;;  %v126_v57 = vld [vmem:[#allocation4] sm:$0xff] }
  0x45   :  { %711 = vmatpush.bf16.msra.mxu2 %v935_v58  ;;  %v496_v59 = vperm.slane %v126_v57, 1  ;;  %v497_v61 = vperm.slane %v126_v57, 2  ;;  %v499_v63 = vperm.slane %v126_v57, 4  ;;  %v500_v0 = vperm.slane %v126_v57, 5 }
  0x46   :  { %724 = vmatpush.bf16.msra.mxu3 %v939_v62  ;;  %v498_v62 = vperm.slane %v126_v57, 3  ;;  %v495_v3 = vperm.slane %v126_v57, 0 }
  0x48   :  { %686 = vmatpush.bf16.msra.mxu0 %v867_v5  ;;  %699 = vmatpush.bf16.msra.mxu1 %v871_v8  ;;  %v501_v8 = vperm.slane %v126_v57, 6 }
  0x49   :  { %712 = vmatpush.bf16.msra.mxu2 %v875_v9  ;;  %v502_v9 = vperm.slane %v126_v57, 7 }
  0x4a   :  { %725 = vmatpush.bf16.msra.mxu3 %v879_v10 }
  0x4b   :  { %1140 = vmatmul.msk.bf16.vlgmr.msra.gmra.mxu0 %vm525_vm1, %v1318_v16  ;;  %1141 = vmatmul.msk.bf16.vlgmr.msra.gmra.mxu1 %vm525_vm1, %v1318_v16 }
  0x4c   :  { %734 = vmatpush.bf16.msrb.mxu0 %v567_v13  ;;  %747 = vmatpush.bf16.msrb.mxu1 %v570_v17 }
  0x4d   :  { %760 = vmatpush.bf16.msrb.mxu2 %v573_v18  ;;  %1143 = vmatmul.msk.bf16.vlgmr.msra.gmra.mxu3 %vm525_vm1, %v1318_v16 }
  0x4e   :  { %1142 = vmatmul.msk.bf16.vlgmr.msra.gmra.mxu2 %vm525_vm1, %v1318_v16 }
  0x50   :  { %735 = vmatpush.bf16.msrb.mxu0 %v1063_v21  ;;  %748 = vmatpush.bf16.msrb.mxu1 %v1067_v22 }
  0x51   :  { %761 = vmatpush.bf16.msrb.mxu2 %v1071_v23 }
  0x54   :  { %736 = vmatpush.bf16.msrb.mxu0 %v1003_v30  ;;  %749 = vmatpush.bf16.msrb.mxu1 %v1007_v31 }
  0x55   :  { %762 = vmatpush.bf16.msrb.mxu2 %v1011_v32 }
  0x58   :  { %737 = vmatpush.bf16.msrb.mxu0 %v943_v39  ;;  %750 = vmatpush.bf16.msrb.mxu1 %v947_v40  ;;  %v127_v40 = vld [vmem:[#allocation4 + $0x8] sm:$0xff] }
  0x59   :  { %763 = vmatpush.bf16.msrb.mxu2 %v951_v41  ;;  %v504_v41 = vperm.slane %v127_v40, 1  ;;  %v505_v42 = vperm.slane %v127_v40, 2  ;;  %v506_v43 = vperm.slane %v127_v40, 3  ;;  %v507_v44 = vperm.slane %v127_v40, 4 }
  0x5a   :  { %v508_v46 = vperm.slane %v127_v40, 5 }
  0x5c   :  { %738 = vmatpush.bf16.msrb.mxu0 %v883_v48  ;;  %751 = vmatpush.bf16.msrb.mxu1 %v887_v49  ;;  %v503_v48 = vperm.slane %v127_v40, 0 }
  0x5d   :  { %764 = vmatpush.bf16.msrb.mxu2 %v891_v50 }
  0x5f   :  { %1144 = vmatmul.msk.bf16.vlgmr.msrb.gmra.mxu0 %vm525_vm1, %v1318_v16  ;;  %1145 = vmatmul.msk.bf16.vlgmr.msrb.gmra.mxu1 %vm525_vm1, %v1318_v16 }
  0x60   :  { %1146 = vmatmul.msk.bf16.vlgmr.msrb.gmra.mxu2 %vm525_vm1, %v1318_v16 }
  0xa0   :  { %v584_v51 = vpop.f32.mrf.mxu0  ;;  %v597_v52 = vpop.f32.mrf.mxu1 }
  0xa1   :  { %v598_v4 = vadd.f32 %v597_v52, %v496_v59  ;;  %v585_v10 = vadd.f32 %v584_v51, %v495_v3 }
  0xa3   :  { %v785_v11 = vrot.slane %v598_v4, 7 }
  0xa5   :  { %v799_v24 = vsel %vm798_vm2, %v585_v10, %v785_v11 }
  0xa8   :  { %v623_v54 = vpop.f32.mrf.mxu3  ;;  %v586_v55 = vpop.f32.mrf.mxu0 }
  0xa9   :  { %v610_v53 = vpop.f32.mrf.mxu2  ;;  %v599_v56 = vpop.f32.mrf.mxu1  ;;  %v624_v16 = vadd.f32 %v623_v54, %v498_v62 }
  0xaa   :  { %v611_v5 = vadd.f32 %v610_v53, %v497_v61 }
  0xab   :  { %v787_v13 = vrot.slane %v624_v16, 5 }
  0xac   :  { %v786_v12 = vrot.slane %v611_v5, 6 }
  0xae   :  { %v801_v25 = vsel %vm800_vm3, %v786_v12, %v787_v13 }
  0xaf   :  { %v803_v29 = vsel %vm802_vm5, %v799_v24, %v801_v25 }
  0xb0   :  { %v625_v60 = vpop.f32.mrf.mxu3 }
  0xb1   :  { %v612_v58 = vpop.f32.mrf.mxu2 }
  0xb2   :  { %v509_v58 = vperm.slane %v127_v40, 6 }
  0xb4   :  { %v636_v1 = vpop.f32.mrf.mxu0  ;;  %v649_v2 = vpop.f32.mrf.mxu1 }
  0xb5   :  { %v637_v6 = vadd.f32 %v636_v1, %v499_v63  ;;  %v650_v7 = vadd.f32 %v649_v2, %v500_v0  ;;  %v821_v0 = vlaneseq }
  0xb7   :  { %v788_v14 = vrot.slane %v637_v6, 4  ;;  %v789_v15 = vrot.slane %v650_v7, 3  ;;  %vm823_vm9 = vcmp.lt.s32.totalorder %v821_v0, 896 }
  0xb9   :  { %v805_v26 = vsel %vm804_vm4, %v788_v14, %v789_v15 }
  0xbc   :  { %v675_v19 = vpop.f32.mrf.mxu3  ;;  %v638_v20 = vpop.f32.mrf.mxu0 }
  0xbd   :  { %v662_v17 = vpop.f32.mrf.mxu2  ;;  %v676_v21 = vadd.f32 %v675_v19, %v502_v9  ;;  %v651_v22 = vpop.f32.mrf.mxu1 }
  0xbe   :  { %v663_v18 = vadd.f32 %v662_v17, %v501_v8 }
  0xbf   :  { %v791_v27 = vrot.slane %v676_v21, 1 }
  0xc0   :  { %v790_v23 = vrot.slane %v663_v18, 2 }
  0xc2   :  { %v807_v28 = vsel %vm806_vm6, %v790_v23, %v791_v27 }
  0xc3   :  { %v809_v30 = vsel %vm808_vm7, %v805_v26, %v807_v28 }
  0xc4   :  { %v811_v31 = vsel %vm810_vm8, %v803_v29, %v809_v30  ;;  %v677_v33 = vpop.f32.mrf.mxu3 }
  0xc5   :  { %v664_v32 = vpop.f32.mrf.mxu2  ;;  %820 = vst [vmem:[%s1379_s3] sm:$0xff] %v811_v31 }
  0xc8   :  { %v688_v34 = vpop.f32.mrf.mxu0  ;;  %v701_v35 = vpop.f32.mrf.mxu1 }
  0xc9   :  { %v702_v49 = vadd.f32 %v701_v35, %v504_v41  ;;  %v689_v56 = vadd.f32 %v688_v34, %v503_v48 }
  0xcb   :  { %v792_v57 = vrot.slane %v702_v49, 7 }
  0xcd   :  { %v812_v3 = vsel %vm798_vm2, %v689_v56, %v792_v57 }
  0xd0   :  { %v727_v37 = vpop.f32.mrf.mxu3  ;;  %v690_v38 = vpop.f32.mrf.mxu0 }
  0xd1   :  { %v714_v36 = vpop.f32.mrf.mxu2  ;;  %v703_v39 = vpop.f32.mrf.mxu1  ;;  %v728_v52 = vadd.f32 %v727_v37, %v506_v43 }
  0xd2   :  { %v715_v51 = vadd.f32 %v714_v36, %v505_v42 }
  0xd3   :  { %v794_v60 = vrot.slane %v728_v52, 5 }
  0xd4   :  { %v793_v59 = vrot.slane %v715_v51, 6 }
  0xd6   :  { %v813_v4 = vsel %vm800_vm3, %v793_v59, %v794_v60 }
  0xd7   :  { %v814_v7 = vsel %vm802_vm5, %v812_v3, %v813_v4 }
  0xd8   :  { %v729_v47 = vpop.f32.mrf.mxu3 }
  0xd9   :  { %v716_v45 = vpop.f32.mrf.mxu2 }
  0xdc   :  { %v740_v50 = vpop.f32.mrf.mxu0  ;;  %v753_v54 = vpop.f32.mrf.mxu1 }
  0xdd   :  { %v741_v53 = vadd.f32 %v740_v50, %v507_v44  ;;  %v754_v55 = vadd.f32 %v753_v54, %v508_v46 }
  0xdf   :  { %v795_v61 = vrot.slane %v741_v53, 4  ;;  %v796_v62 = vrot.slane %v754_v55, 3 }
  0xe1   :  { %v815_v5 = vsel %vm804_vm4, %v795_v61, %v796_v62 }
  0xe3   :  { %v766_v63 = vpop.f32.mrf.mxu2 }
  0xe4   :  { %v767_v1 = vadd.f32 %v766_v63, %v509_v58  ;;  %v742_v2 = vpop.f32.mrf.mxu0  ;;  %v755_v16 = vpop.f32.mrf.mxu1 }
  0xe6   :  { %v797_v6 = vrot.slane %v767_v1, 2 }
  0xe8   :  { %v816_v8 = vsel %vm808_vm7, %v815_v5, %v797_v6 }
  0xe9   :  { %v817_v9 = vsel %vm810_vm8, %v814_v7, %v816_v8 }
  0xea   :  { %825 = vst.msk [vmem:[%s1379_s3 + $0x8] sm:$0x7f] %vm823_vm9, %v817_v9 }
  0xeb   :  { %v768_v10 = vpop.f32.mrf.mxu2 }
  0xec   :  { %830 = vsyncpa [#allocation3], 1 }
  0xed   :  { %831 = vsyncpa [#allocation5], 1 }

</bundles_post_ra>
